<compile_context>
chip_gen: v7x
topology: tpu7x:2x2x1
jax: 0.10.0
libtpu: 0.0.40
codegen_flags: <defaults>
</compile_context>

<pallas_src>
import functools

import jax
import jax.numpy as jnp
from jax import lax
from jax.experimental import pallas as pl
from jax.experimental.pallas import tpu as pltpu

_VMEM_LIMIT = 32 * 1024 * 1024  # above default scoped limits, well below physical on all gens


# ----------------------------------------------------------------------------
# Pallas kernels
# ----------------------------------------------------------------------------
def _lstm_cell(h, c, gates_x_t, whh, *, hidden, mxu_dtype):
    """PyTorch LSTM cell. h/c/gates in f32; recurrent matmul in bf16 on the MXU, f32 acc."""
    gates = gates_x_t + jnp.dot(
        h.astype(mxu_dtype), whh, preferred_element_type=jnp.float32
    )
    H = hidden
    i_g = jax.nn.sigmoid(gates[:, 0 * H:1 * H])
    f_g = jax.nn.sigmoid(gates[:, 1 * H:2 * H])
    g_g = jnp.tanh(gates[:, 2 * H:3 * H])
    o_g = jax.nn.sigmoid(gates[:, 3 * H:4 * H])
    c_new = f_g * c + i_g * g_g
    h_new = o_g * jnp.tanh(c_new)
    return h_new, c_new


def _lstm_layer_kernel(x_ref, wih_ref, bias_ref, whh_ref, out_ref, h_sc, c_sc, *,
                       batch, hidden, t_chunk, mxu_dtype):
    """One (non-final) LSTM layer, fully fused.

    Per grid step: one MXU matmul computes gates_x for t_chunk timesteps from the x slab,
    then the (unavoidably sequential) recurrence runs with static in-block indices.
    h/c are carried across grid steps in VMEM scratch (grid axis is 'arbitrary').
    """
    step = pl.program_id(0)

    @pl.when(step == 0)
    def _():
        h_sc[...] = jnp.zeros_like(h_sc)
        c_sc[...] = jnp.zeros_like(c_sc)

    # Hoisted out of the timestep loop: weights / bias loaded once per grid step.
    wih = wih_ref[...]          # (K, 4H) bf16
    whh = whh_ref[...]          # (H, 4H) bf16
    bias = bias_ref[...]        # (1, 4H) f32

    # Input projection for the whole chunk in one MXU pass: (t_chunk*B, K) @ (K, 4H).
    gx = jnp.dot(x_ref[...], wih, preferred_element_type=jnp.float32) + bias

    h = h_sc[...]
    c = c_sc[...]
    for t in range(t_chunk):                      # fully unrolled, static slices
        gx_t = gx[t * batch:(t + 1) * batch, :]
        h, c = _lstm_cell(h, c, gx_t, whh, hidden=hidden, mxu_dtype=mxu_dtype)
        out_ref[t] = h.astype(out_ref.dtype)
    h_sc[...] = h
    c_sc[...] = c


def _lstm_last_kernel(x_ref, wih_ref, bias_ref, whh_ref, wfc_ref, bfc_ref, out_ref,
                      h_sc, c_sc, *, batch, hidden, t_chunk, mxu_dtype):
    """Top LSTM layer fused with the FC head.

    No per-timestep writeback (only the final hidden state is consumed); the (B,H)x(H,O)
    Linear is applied on the last grid step directly from the f32 hidden state.
    """
    step = pl.program_id(0)

    @pl.when(step == 0)
    def _():
        h_sc[...] = jnp.zeros_like(h_sc)
        c_sc[...] = jnp.zeros_like(c_sc)

    wih = wih_ref[...]
    whh = whh_ref[...]
    bias = bias_ref[...]
    gx = jnp.dot(x_ref[...], wih, preferred_element_type=jnp.float32) + bias

    h = h_sc[...]
    c = c_sc[...]
    for t in range(t_chunk):
        gx_t = gx[t * batch:(t + 1) * batch, :]
        h, c = _lstm_cell(h, c, gx_t, whh, hidden=hidden, mxu_dtype=mxu_dtype)
    h_sc[...] = h
    c_sc[...] = c

    @pl.when(step == pl.num_programs(0) - 1)
    def _():
        out_ref[...] = (
            jnp.dot(h, wfc_ref[...], preferred_element_type=jnp.float32) + bfc_ref[...]
        ).astype(out_ref.dtype)


# ----------------------------------------------------------------------------
# Wrappers
# ----------------------------------------------------------------------------
def _pick_t_chunk(seq_len, batch, cap=32):
    """Largest divisor of seq_len <= cap with a sublane-aligned (t_chunk*batch) slab."""
    for d in range(min(seq_len, cap), 0, -1):
        if seq_len % d == 0 and (d * batch) % 8 == 0:
            return d
    return seq_len  # full sequence in one step; full-dim blocks are always (8,128)-legal


def _const_spec(shape):
    """BlockSpec for a block that never changes across the grid: single-buffer it."""
    zeros = (0,) * len(shape)
    return pl.BlockSpec(shape, lambda *_: zeros, pipeline_mode=pl.Buffered(1))


def _prep_layer_weights(layer, compute_dtype):
    H = layer["w_hh"].shape[1]
    w_ih_t = jnp.transpose(layer["w_ih"]).astype(compute_dtype)   # (in, 4H) bf16
    w_hh_t = jnp.transpose(layer["w_hh"]).astype(compute_dtype)   # (H, 4H)  bf16
    bias = (layer["b_ih"] + layer["b_hh"]).astype(jnp.float32).reshape(1, 4 * H)
    return w_ih_t, w_hh_t, bias


def lstm_layer_pallas(x_tm, layer, *, t_chunk, compute_dtype=jnp.bfloat16):
    """One (non-final) LSTM layer: x_tm (S, B, in) -> all hidden states (S, B, H) in bf16."""
    S, B, K = x_tm.shape
    H = layer["w_hh"].shape[1]
    G = 4 * H
    w_ih_t, w_hh_t, bias = _prep_layer_weights(layer, compute_dtype)
    x2d = x_tm.reshape(S * B, K).astype(compute_dtype)   # collapse leading dims (free in XLA)
    tm = t_chunk * B

    kernel = functools.partial(
        _lstm_layer_kernel, batch=B, hidden=H, t_chunk=t_chunk, mxu_dtype=compute_dtype)
    return pl.pallas_call(
        kernel,
        out_shape=jax.ShapeDtypeStruct((S, B, H), compute_dtype),   # bf16 inter-layer acts
        grid_spec=pltpu.PrefetchScalarGridSpec(
            num_scalar_prefetch=0,
            grid=(S // t_chunk,),
            in_specs=[
                pl.BlockSpec((tm, K), lambda c: (c, 0)),   # x slab for this chunk
                _const_spec((K, G)),                       # W_ih^T
                _const_spec((1, G)),                       # b_ih + b_hh
                _const_spec((H, G)),                       # W_hh^T
            ],
            out_specs=pl.BlockSpec((t_chunk, B, H), lambda c: (c, 0, 0)),
            scratch_shapes=[
                pltpu.VMEM((B, H), jnp.float32),   # h carry (f32)
                pltpu.VMEM((B, H), jnp.float32),   # c carry (f32)
            ],
        ),
        compiler_params=pltpu.CompilerParams(
            dimension_semantics=("arbitrary",),    # sequential: h/c live across grid steps
            vmem_limit_bytes=_VMEM_LIMIT,
        ),
    )(x2d, w_ih_t, bias, w_hh_t)


def lstm_last_layer_fc_pallas(x_tm, layer, fc_w, fc_b, *, t_chunk, compute_dtype=jnp.bfloat16):
    """Top LSTM layer + fused FC head: x_tm (S, B, in) -> (B, O) f32."""
    S, B, K = x_tm.shape
    H = layer["w_hh"].shape[1]
    G = 4 * H
    O = fc_w.shape[0]
    w_ih_t, w_hh_t, bias = _prep_layer_weights(layer, compute_dtype)
    x2d = x_tm.reshape(S * B, K).astype(compute_dtype)
    tm = t_chunk * B

    w_fc_t = jnp.transpose(fc_w).astype(jnp.float32)   # (H, O); FC runs once -> keep f32
    b_fc = fc_b.astype(jnp.float32).reshape(1, O)

    kernel = functools.partial(
        _lstm_last_kernel, batch=B, hidden=H, t_chunk=t_chunk, mxu_dtype=compute_dtype)
    return pl.pallas_call(
        kernel,
        out_shape=jax.ShapeDtypeStruct((B, O), jnp.float32),
        grid_spec=pltpu.PrefetchScalarGridSpec(
            num_scalar_prefetch=0,
            grid=(S // t_chunk,),
            in_specs=[
                pl.BlockSpec((tm, K), lambda c: (c, 0)),
                _const_spec((K, G)),
                _const_spec((1, G)),
                _const_spec((H, G)),
                _const_spec((H, O)),
                _const_spec((1, O)),
            ],
            out_specs=pl.BlockSpec((B, O), lambda c: (0, 0)),   # resident; written on last step
            scratch_shapes=[
                pltpu.VMEM((B, H), jnp.float32),
                pltpu.VMEM((B, H), jnp.float32),
            ],
        ),
        compiler_params=pltpu.CompilerParams(
            dimension_semantics=("arbitrary",),
            vmem_limit_bytes=_VMEM_LIMIT,
        ),
    )(x2d, w_ih_t, bias, w_hh_t, w_fc_t, b_fc)


def lstm_model_forward(x, params, compute_dtype=jnp.bfloat16):
    """x: (B, S, input_size) — PyTorch batch_first=True. Returns (B, output_size) in f32."""
    x_tm = jnp.transpose(x, (1, 0, 2))   # time-major (S, B, in); grid walks the seq axis
    S, B, _ = x_tm.shape
    t_chunk = _pick_t_chunk(S, B)
    layers = params["lstm"]
    h_seq = x_tm
    for layer in layers[:-1]:
        h_seq = lstm_layer_pallas(h_seq, layer, t_chunk=t_chunk, compute_dtype=compute_dtype)
    return lstm_last_layer_fc_pallas(
        h_seq, layers[-1], params["fc_w"], params["fc_b"],
        t_chunk=t_chunk, compute_dtype=compute_dtype)


# ----------------------------------------------------------------------------
# Deterministic parameter init (mimics PyTorch: U(-1/sqrt(H), 1/sqrt(H)))
# ----------------------------------------------------------------------------
def init_params(key, input_size, hidden_size, num_layers, output_size):
    k = 1.0 / jnp.sqrt(hidden_size)
    params = {"lstm": []}
    for l in range(num_layers):
        in_sz = input_size if l == 0 else hidden_size
        key, k1, k2, k3, k4 = jax.random.split(key, 5)
        params["lstm"].append(
            {
                "w_ih": jax.random.uniform(k1, (4 * hidden_size, in_sz), jnp.float32, -k, k),
                "w_hh": jax.random.uniform(k2, (4 * hidden_size, hidden_size), jnp.float32, -k, k),
                "b_ih": jax.random.uniform(k3, (4 * hidden_size,), jnp.float32, -k, k),
                "b_hh": jax.random.uniform(k4, (4 * hidden_size,), jnp.float32, -k, k),
            }
        )
    key, k5, k6 = jax.random.split(key, 3)
    params["fc_w"] = jax.random.uniform(k5, (output_size, hidden_size), jnp.float32, -k, k)
    params["fc_b"] = jax.random.uniform(k6, (output_size,), jnp.float32, -k, k)
    return params


# ----------------------------------------------------------------------------
# Pure-JAX reference (same math, same bf16 rounding points, f32 accumulation)
# ----------------------------------------------------------------------------
def lstm_model_reference(x, params, compute_dtype=jnp.bfloat16):
    f32 = jnp.float32
    hi = lax.Precision.HIGHEST

    def rt(a):  # round-trip through the MXU compute dtype (matches kernel casts)
        return a.astype(compute_dtype).astype(f32)

    x_tm = jnp.transpose(x, (1, 0, 2))
    h_seq = rt(x_tm)
    h_last = None
    for layer in params["lstm"]:
        H = layer["w_hh"].shape[1]
        B = h_seq.shape[1]
        w_ih_t = rt(layer["w_ih"]).T
        w_hh_t = rt(layer["w_hh"]).T
        bias = (layer["b_ih"] + layer["b_hh"]).astype(f32)
        gx = jnp.einsum("sbi,ig->sbg", h_seq, w_ih_t, precision=hi) + bias

        def step(carry, gx_t):
            h, c = carry
            g = gx_t + jnp.dot(rt(h), w_hh_t, precision=hi)
            i = jax.nn.sigmoid(g[:, 0 * H:1 * H])
            f = jax.nn.sigmoid(g[:, 1 * H:2 * H])
            gg = jnp.tanh(g[:, 2 * H:3 * H])
            o = jax.nn.sigmoid(g[:, 3 * H:4 * H])
            c = f * c + i * gg
            h = o * jnp.tanh(c)
            return (h, c), h

        init = (jnp.zeros((B, H), f32), jnp.zeros((B, H), f32))
        (h_last, _), hs = lax.scan(step, init, gx)
        h_seq = rt(hs)   # next layer consumes bf16-rounded activations, like the kernel
    return (jnp.dot(h_last, params["fc_w"].T.astype(f32), precision=hi)
            + params["fc_b"].astype(f32))


# ----------------------------------------------------------------------------
if __name__ == "__main__":
    batch = 4
    seq = 8
    input_size = 16
    hidden_size = 32
    num_layers = 2
    output_size = 4

    key = jax.random.PRNGKey(0)
    key, pkey, xkey = jax.random.split(key, 3)

    params = init_params(pkey, input_size, hidden_size, num_layers, output_size)
    x = jax.random.normal(xkey, (batch, seq, input_size), jnp.float32)

    out = jax.block_until_ready(lstm_model_forward(x, params))
    ref = jax.block_until_ready(lstm_model_reference(x, params))

    assert out.shape == (batch, output_size)
    assert jnp.allclose(out, ref, atol=2e-3, rtol=2e-3), (
        "Pallas output mismatch vs reference; max abs err = "
        f"{float(jnp.max(jnp.abs(out - ref))):.3e}"
    )
    print("KERNEL_OK")
</pallas_src>

<mosaic_0001>
module attributes {stable_mosaic.version = 11 : i64} {
  func.func @_lstm_layer_kernel(%arg0: i32, %arg1: memref<32x16xbf16, #tpu.memory_space<vmem>>, %arg2: memref<16x128xbf16, #tpu.memory_space<vmem>>, %arg3: memref<1x128xf32, #tpu.memory_space<vmem>>, %arg4: memref<32x128xbf16, #tpu.memory_space<vmem>>, %arg5: memref<8x4x32xbf16, #tpu.memory_space<vmem>>, %arg6: memref<4x32xf32, #tpu.memory_space<vmem>>, %arg7: memref<4x32xf32, #tpu.memory_space<vmem>>) attributes {dimension_semantics = [#tpu.dimension_semantics<arbitrary>], iteration_bounds = array<i64: 1>, scalar_prefetch = 0 : i64, scratch_operands = 2 : i64, tpu.core_type = #tpu.core_type<tc>, window_params = [{transform_indices = @transform_0, window_bounds = array<i64: 32, 16>}, {pipeline_mode = #tpu.pipeline_mode<synchronous>, transform_indices = @transform_1, window_bounds = array<i64: 16, 128>}, {pipeline_mode = #tpu.pipeline_mode<synchronous>, transform_indices = @transform_2, window_bounds = array<i64: 1, 128>}, {pipeline_mode = #tpu.pipeline_mode<synchronous>, transform_indices = @transform_3, window_bounds = array<i64: 32, 128>}, {transform_indices = @transform_4, window_bounds = array<i64: 8, 4, 32>}]} {
    %c0_i32 = arith.constant 0 : i32
    %0 = arith.cmpi eq, %arg0, %c0_i32 : i32
    %1 = arith.extui %0 : i1 to i32
    %c0_i32_0 = arith.constant 0 : i32
    %2 = arith.cmpi ne, %1, %c0_i32_0 : i32
    scf.if %2 {
      %cst_65 = arith.constant 0.000000e+00 : f32
      %278 = vector.broadcast %cst_65 : f32 to vector<4x32xf32>
      %c0_66 = arith.constant 0 : index
      %c0_67 = arith.constant 0 : index
      %279 = vector.load %arg6[%c0_66, %c0_67] : memref<4x32xf32, #tpu.memory_space<vmem>>, vector<4x32xf32>
      tpu.vector_store %arg6[%c0_66, %c0_67], %278 {strides = array<i32>} : memref<4x32xf32, #tpu.memory_space<vmem>>, vector<4x32xf32>,
      %cst_68 = arith.constant 0.000000e+00 : f32
      %280 = vector.broadcast %cst_68 : f32 to vector<4x32xf32>
      %c0_69 = arith.constant 0 : index
      %c0_70 = arith.constant 0 : index
      %281 = vector.load %arg7[%c0_69, %c0_70] : memref<4x32xf32, #tpu.memory_space<vmem>>, vector<4x32xf32>
      tpu.vector_store %arg7[%c0_69, %c0_70], %280 {strides = array<i32>} : memref<4x32xf32, #tpu.memory_space<vmem>>, vector<4x32xf32>,
    } else {
    }
    %c0 = arith.constant 0 : index
    %c0_1 = arith.constant 0 : index
    %3 = vector.load %arg2[%c0, %c0_1] : memref<16x128xbf16, #tpu.memory_space<vmem>>, vector<16x128xbf16>
    %c0_2 = arith.constant 0 : index
    %c0_3 = arith.constant 0 : index
    %4 = vector.load %arg4[%c0_2, %c0_3] : memref<32x128xbf16, #tpu.memory_space<vmem>>, vector<32x128xbf16>
    %c0_4 = arith.constant 0 : index
    %c0_5 = arith.constant 0 : index
    %5 = vector.load %arg3[%c0_4, %c0_5] : memref<1x128xf32, #tpu.memory_space<vmem>>, vector<1x128xf32>
    %c0_6 = arith.constant 0 : index
    %c0_7 = arith.constant 0 : index
    %6 = vector.load %arg1[%c0_6, %c0_7] : memref<32x16xbf16, #tpu.memory_space<vmem>>, vector<32x16xbf16>
    %cst = arith.constant dense<0.000000e+00> : vector<32x128xf32>
    %7 = tpu.matmul %6, %3, %cst {dimension_numbers = #tpu.dot_dimension_numbers<[1], [0], [0], [1], [0, 0, 1, 1], [], []>} : vector<32x16xbf16>, vector<16x128xbf16>, vector<32x128xf32> -> vector<32x128xf32>
    %8 = vector.broadcast %5 : vector<1x128xf32> to vector<32x128xf32>
    %9 = arith.addf %7, %8 : vector<32x128xf32>
    %c0_8 = arith.constant 0 : index
    %c0_9 = arith.constant 0 : index
    %10 = vector.load %arg6[%c0_8, %c0_9] : memref<4x32xf32, #tpu.memory_space<vmem>>, vector<4x32xf32>
    %c0_10 = arith.constant 0 : index
    %c0_11 = arith.constant 0 : index
    %11 = vector.load %arg7[%c0_10, %c0_11] : memref<4x32xf32, #tpu.memory_space<vmem>>, vector<4x32xf32>
    %12 = vector.extract_strided_slice %9 {offsets = [0, 0], sizes = [4, 128], strides = [1, 1]} : vector<32x128xf32> to vector<4x128xf32>
    %13 = arith.truncf %10 : vector<4x32xf32> to vector<4x32xbf16>
    %cst_12 = arith.constant dense<0.000000e+00> : vector<4x128xf32>
    %14 = tpu.matmul %13, %4, %cst_12 {dimension_numbers = #tpu.dot_dimension_numbers<[1], [0], [0], [1], [0, 0, 1, 1], [], []>} : vector<4x32xbf16>, vector<32x128xbf16>, vector<4x128xf32> -> vector<4x128xf32>
    %15 = arith.addf %12, %14 : vector<4x128xf32>
    %16 = vector.extract_strided_slice %15 {offsets = [0, 0], sizes = [4, 32], strides = [1, 1]} : vector<4x128xf32> to vector<4x32xf32>
    %17 = arith.negf %16 : vector<4x32xf32>
    %18 = math.exp %17 : vector<4x32xf32>
    %cst_13 = arith.constant 1.000000e+00 : f32
    %19 = vector.broadcast %cst_13 : f32 to vector<4x32xf32>
    %20 = arith.addf %19, %18 : vector<4x32xf32>
    %21 = arith.divf %19, %20 : vector<4x32xf32>
    %22 = vector.extract_strided_slice %15 {offsets = [0, 32], sizes = [4, 32], strides = [1, 1]} : vector<4x128xf32> to vector<4x32xf32>
    %23 = arith.negf %22 : vector<4x32xf32>
    %24 = math.exp %23 : vector<4x32xf32>
    %cst_14 = arith.constant 1.000000e+00 : f32
    %25 = vector.broadcast %cst_14 : f32 to vector<4x32xf32>
    %26 = arith.addf %25, %24 : vector<4x32xf32>
    %27 = arith.divf %25, %26 : vector<4x32xf32>
    %28 = vector.extract_strided_slice %15 {offsets = [0, 64], sizes = [4, 32], strides = [1, 1]} : vector<4x128xf32> to vector<4x32xf32>
    %29 = math.tanh %28 : vector<4x32xf32>
    %30 = vector.extract_strided_slice %15 {offsets = [0, 96], sizes = [4, 32], strides = [1, 1]} : vector<4x128xf32> to vector<4x32xf32>
    %31 = arith.negf %30 : vector<4x32xf32>
    %32 = math.exp %31 : vector<4x32xf32>
    %cst_15 = arith.constant 1.000000e+00 : f32
    %33 = vector.broadcast %cst_15 : f32 to vector<4x32xf32>
    %34 = arith.addf %33, %32 : vector<4x32xf32>
    %35 = arith.divf %33, %34 : vector<4x32xf32>
    %36 = arith.mulf %27, %11 : vector<4x32xf32>
    %37 = arith.mulf %21, %29 : vector<4x32xf32>
    %38 = arith.addf %36, %37 : vector<4x32xf32>
    %39 = math.tanh %38 : vector<4x32xf32>
    %40 = arith.mulf %35, %39 : vector<4x32xf32>
    %41 = arith.truncf %40 : vector<4x32xf32> to vector<4x32xbf16>
    %c0_16 = arith.constant 0 : index
    %c0_17 = arith.constant 0 : index
    %c0_18 = arith.constant 0 : index
    %42 = vector.load %arg5[%c0_16, %c0_17, %c0_18] : memref<8x4x32xbf16, #tpu.memory_space<vmem>>, vector<1x4x32xbf16>
    %43 = vector.shape_cast %42 : vector<1x4x32xbf16> to vector<4x32xbf16>
    %44 = vector.shape_cast %41 : vector<4x32xbf16> to vector<1x4x32xbf16>
    tpu.vector_store %arg5[%c0_16, %c0_17, %c0_18], %44 {strides = array<i32>} : memref<8x4x32xbf16, #tpu.memory_space<vmem>>, vector<1x4x32xbf16>,
    %45 = vector.extract_strided_slice %9 {offsets = [4, 0], sizes = [4, 128], strides = [1, 1]} : vector<32x128xf32> to vector<4x128xf32>
    %46 = arith.truncf %40 : vector<4x32xf32> to vector<4x32xbf16>
    %cst_19 = arith.constant dense<0.000000e+00> : vector<4x128xf32>
    %47 = tpu.matmul %46, %4, %cst_19 {dimension_numbers = #tpu.dot_dimension_numbers<[1], [0], [0], [1], [0, 0, 1, 1], [], []>} : vector<4x32xbf16>, vector<32x128xbf16>, vector<4x128xf32> -> vector<4x128xf32>
    %48 = arith.addf %45, %47 : vector<4x128xf32>
    %49 = vector.extract_strided_slice %48 {offsets = [0, 0], sizes = [4, 32], strides = [1, 1]} : vector<4x128xf32> to vector<4x32xf32>
    %50 = arith.negf %49 : vector<4x32xf32>
    %51 = math.exp %50 : vector<4x32xf32>
    %cst_20 = arith.constant 1.000000e+00 : f32
    %52 = vector.broadcast %cst_20 : f32 to vector<4x32xf32>
    %53 = arith.addf %52, %51 : vector<4x32xf32>
    %54 = arith.divf %52, %53 : vector<4x32xf32>
    %55 = vector.extract_strided_slice %48 {offsets = [0, 32], sizes = [4, 32], strides = [1, 1]} : vector<4x128xf32> to vector<4x32xf32>
    %56 = arith.negf %55 : vector<4x32xf32>
    %57 = math.exp %56 : vector<4x32xf32>
    %cst_21 = arith.constant 1.000000e+00 : f32
    %58 = vector.broadcast %cst_21 : f32 to vector<4x32xf32>
    %59 = arith.addf %58, %57 : vector<4x32xf32>
    %60 = arith.divf %58, %59 : vector<4x32xf32>
    %61 = vector.extract_strided_slice %48 {offsets = [0, 64], sizes = [4, 32], strides = [1, 1]} : vector<4x128xf32> to vector<4x32xf32>
    %62 = math.tanh %61 : vector<4x32xf32>
    %63 = vector.extract_strided_slice %48 {offsets = [0, 96], sizes = [4, 32], strides = [1, 1]} : vector<4x128xf32> to vector<4x32xf32>
    %64 = arith.negf %63 : vector<4x32xf32>
    %65 = math.exp %64 : vector<4x32xf32>
    %cst_22 = arith.constant 1.000000e+00 : f32
    %66 = vector.broadcast %cst_22 : f32 to vector<4x32xf32>
    %67 = arith.addf %66, %65 : vector<4x32xf32>
    %68 = arith.divf %66, %67 : vector<4x32xf32>
    %69 = arith.mulf %60, %38 : vector<4x32xf32>
    %70 = arith.mulf %54, %62 : vector<4x32xf32>
    %71 = arith.addf %69, %70 : vector<4x32xf32>
    %72 = math.tanh %71 : vector<4x32xf32>
    %73 = arith.mulf %68, %72 : vector<4x32xf32>
    %74 = arith.truncf %73 : vector<4x32xf32> to vector<4x32xbf16>
    %c1 = arith.constant 1 : index
    %c0_23 = arith.constant 0 : index
    %c0_24 = arith.constant 0 : index
    %75 = vector.load %arg5[%c1, %c0_23, %c0_24] : memref<8x4x32xbf16, #tpu.memory_space<vmem>>, vector<1x4x32xbf16>
    %76 = vector.shape_cast %75 : vector<1x4x32xbf16> to vector<4x32xbf16>
    %77 = vector.shape_cast %74 : vector<4x32xbf16> to vector<1x4x32xbf16>
    tpu.vector_store %arg5[%c1, %c0_23, %c0_24], %77 {strides = array<i32>} : memref<8x4x32xbf16, #tpu.memory_space<vmem>>, vector<1x4x32xbf16>,
    %78 = vector.extract_strided_slice %9 {offsets = [8, 0], sizes = [4, 128], strides = [1, 1]} : vector<32x128xf32> to vector<4x128xf32>
    %79 = arith.truncf %73 : vector<4x32xf32> to vector<4x32xbf16>
    %cst_25 = arith.constant dense<0.000000e+00> : vector<4x128xf32>
    %80 = tpu.matmul %79, %4, %cst_25 {dimension_numbers = #tpu.dot_dimension_numbers<[1], [0], [0], [1], [0, 0, 1, 1], [], []>} : vector<4x32xbf16>, vector<32x128xbf16>, vector<4x128xf32> -> vector<4x128xf32>
    %81 = arith.addf %78, %80 : vector<4x128xf32>
    %82 = vector.extract_strided_slice %81 {offsets = [0, 0], sizes = [4, 32], strides = [1, 1]} : vector<4x128xf32> to vector<4x32xf32>
    %83 = arith.negf %82 : vector<4x32xf32>
    %84 = math.exp %83 : vector<4x32xf32>
    %cst_26 = arith.constant 1.000000e+00 : f32
    %85 = vector.broadcast %cst_26 : f32 to vector<4x32xf32>
    %86 = arith.addf %85, %84 : vector<4x32xf32>
    %87 = arith.divf %85, %86 : vector<4x32xf32>
    %88 = vector.extract_strided_slice %81 {offsets = [0, 32], sizes = [4, 32], strides = [1, 1]} : vector<4x128xf32> to vector<4x32xf32>
    %89 = arith.negf %88 : vector<4x32xf32>
    %90 = math.exp %89 : vector<4x32xf32>
    %cst_27 = arith.constant 1.000000e+00 : f32
    %91 = vector.broadcast %cst_27 : f32 to vector<4x32xf32>
    %92 = arith.addf %91, %90 : vector<4x32xf32>
    %93 = arith.divf %91, %92 : vector<4x32xf32>
    %94 = vector.extract_strided_slice %81 {offsets = [0, 64], sizes = [4, 32], strides = [1, 1]} : vector<4x128xf32> to vector<4x32xf32>
    %95 = math.tanh %94 : vector<4x32xf32>
    %96 = vector.extract_strided_slice %81 {offsets = [0, 96], sizes = [4, 32], strides = [1, 1]} : vector<4x128xf32> to vector<4x32xf32>
    %97 = arith.negf %96 : vector<4x32xf32>
    %98 = math.exp %97 : vector<4x32xf32>
    %cst_28 = arith.constant 1.000000e+00 : f32
    %99 = vector.broadcast %cst_28 : f32 to vector<4x32xf32>
    %100 = arith.addf %99, %98 : vector<4x32xf32>
    %101 = arith.divf %99, %100 : vector<4x32xf32>
    %102 = arith.mulf %93, %71 : vector<4x32xf32>
    %103 = arith.mulf %87, %95 : vector<4x32xf32>
    %104 = arith.addf %102, %103 : vector<4x32xf32>
    %105 = math.tanh %104 : vector<4x32xf32>
    %106 = arith.mulf %101, %105 : vector<4x32xf32>
    %107 = arith.truncf %106 : vector<4x32xf32> to vector<4x32xbf16>
    %c2 = arith.constant 2 : index
    %c0_29 = arith.constant 0 : index
    %c0_30 = arith.constant 0 : index
    %108 = vector.load %arg5[%c2, %c0_29, %c0_30] : memref<8x4x32xbf16, #tpu.memory_space<vmem>>, vector<1x4x32xbf16>
    %109 = vector.shape_cast %108 : vector<1x4x32xbf16> to vector<4x32xbf16>
    %110 = vector.shape_cast %107 : vector<4x32xbf16> to vector<1x4x32xbf16>
    tpu.vector_store %arg5[%c2, %c0_29, %c0_30], %110 {strides = array<i32>} : memref<8x4x32xbf16, #tpu.memory_space<vmem>>, vector<1x4x32xbf16>,
    %111 = vector.extract_strided_slice %9 {offsets = [12, 0], sizes = [4, 128], strides = [1, 1]} : vector<32x128xf32> to vector<4x128xf32>
    %112 = arith.truncf %106 : vector<4x32xf32> to vector<4x32xbf16>
    %cst_31 = arith.constant dense<0.000000e+00> : vector<4x128xf32>
    %113 = tpu.matmul %112, %4, %cst_31 {dimension_numbers = #tpu.dot_dimension_numbers<[1], [0], [0], [1], [0, 0, 1, 1], [], []>} : vector<4x32xbf16>, vector<32x128xbf16>, vector<4x128xf32> -> vector<4x128xf32>
    %114 = arith.addf %111, %113 : vector<4x128xf32>
    %115 = vector.extract_strided_slice %114 {offsets = [0, 0], sizes = [4, 32], strides = [1, 1]} : vector<4x128xf32> to vector<4x32xf32>
    %116 = arith.negf %115 : vector<4x32xf32>
    %117 = math.exp %116 : vector<4x32xf32>
    %cst_32 = arith.constant 1.000000e+00 : f32
    %118 = vector.broadcast %cst_32 : f32 to vector<4x32xf32>
    %119 = arith.addf %118, %117 : vector<4x32xf32>
    %120 = arith.divf %118, %119 : vector<4x32xf32>
    %121 = vector.extract_strided_slice %114 {offsets = [0, 32], sizes = [4, 32], strides = [1, 1]} : vector<4x128xf32> to vector<4x32xf32>
    %122 = arith.negf %121 : vector<4x32xf32>
    %123 = math.exp %122 : vector<4x32xf32>
    %cst_33 = arith.constant 1.000000e+00 : f32
    %124 = vector.broadcast %cst_33 : f32 to vector<4x32xf32>
    %125 = arith.addf %124, %123 : vector<4x32xf32>
    %126 = arith.divf %124, %125 : vector<4x32xf32>
    %127 = vector.extract_strided_slice %114 {offsets = [0, 64], sizes = [4, 32], strides = [1, 1]} : vector<4x128xf32> to vector<4x32xf32>
    %128 = math.tanh %127 : vector<4x32xf32>
    %129 = vector.extract_strided_slice %114 {offsets = [0, 96], sizes = [4, 32], strides = [1, 1]} : vector<4x128xf32> to vector<4x32xf32>
    %130 = arith.negf %129 : vector<4x32xf32>
    %131 = math.exp %130 : vector<4x32xf32>
    %cst_34 = arith.constant 1.000000e+00 : f32
    %132 = vector.broadcast %cst_34 : f32 to vector<4x32xf32>
    %133 = arith.addf %132, %131 : vector<4x32xf32>
    %134 = arith.divf %132, %133 : vector<4x32xf32>
    %135 = arith.mulf %126, %104 : vector<4x32xf32>
    %136 = arith.mulf %120, %128 : vector<4x32xf32>
    %137 = arith.addf %135, %136 : vector<4x32xf32>
    %138 = math.tanh %137 : vector<4x32xf32>
    %139 = arith.mulf %134, %138 : vector<4x32xf32>
    %140 = arith.truncf %139 : vector<4x32xf32> to vector<4x32xbf16>
    %c3 = arith.constant 3 : index
    %c0_35 = arith.constant 0 : index
    %c0_36 = arith.constant 0 : index
    %141 = vector.load %arg5[%c3, %c0_35, %c0_36] : memref<8x4x32xbf16, #tpu.memory_space<vmem>>, vector<1x4x32xbf16>
    %142 = vector.shape_cast %141 : vector<1x4x32xbf16> to vector<4x32xbf16>
    %143 = vector.shape_cast %140 : vector<4x32xbf16> to vector<1x4x32xbf16>
    tpu.vector_store %arg5[%c3, %c0_35, %c0_36], %143 {strides = array<i32>} : memref<8x4x32xbf16, #tpu.memory_space<vmem>>, vector<1x4x32xbf16>,
    %144 = vector.extract_strided_slice %9 {offsets = [16, 0], sizes = [4, 128], strides = [1, 1]} : vector<32x128xf32> to vector<4x128xf32>
    %145 = arith.truncf %139 : vector<4x32xf32> to vector<4x32xbf16>
    %cst_37 = arith.constant dense<0.000000e+00> : vector<4x128xf32>
    %146 = tpu.matmul %145, %4, %cst_37 {dimension_numbers = #tpu.dot_dimension_numbers<[1], [0], [0], [1], [0, 0, 1, 1], [], []>} : vector<4x32xbf16>, vector<32x128xbf16>, vector<4x128xf32> -> vector<4x128xf32>
    %147 = arith.addf %144, %146 : vector<4x128xf32>
    %148 = vector.extract_strided_slice %147 {offsets = [0, 0], sizes = [4, 32], strides = [1, 1]} : vector<4x128xf32> to vector<4x32xf32>
    %149 = arith.negf %148 : vector<4x32xf32>
    %150 = math.exp %149 : vector<4x32xf32>
    %cst_38 = arith.constant 1.000000e+00 : f32
    %151 = vector.broadcast %cst_38 : f32 to vector<4x32xf32>
    %152 = arith.addf %151, %150 : vector<4x32xf32>
    %153 = arith.divf %151, %152 : vector<4x32xf32>
    %154 = vector.extract_strided_slice %147 {offsets = [0, 32], sizes = [4, 32], strides = [1, 1]} : vector<4x128xf32> to vector<4x32xf32>
    %155 = arith.negf %154 : vector<4x32xf32>
    %156 = math.exp %155 : vector<4x32xf32>
    %cst_39 = arith.constant 1.000000e+00 : f32
    %157 = vector.broadcast %cst_39 : f32 to vector<4x32xf32>
    %158 = arith.addf %157, %156 : vector<4x32xf32>
    %159 = arith.divf %157, %158 : vector<4x32xf32>
    %160 = vector.extract_strided_slice %147 {offsets = [0, 64], sizes = [4, 32], strides = [1, 1]} : vector<4x128xf32> to vector<4x32xf32>
    %161 = math.tanh %160 : vector<4x32xf32>
    %162 = vector.extract_strided_slice %147 {offsets = [0, 96], sizes = [4, 32], strides = [1, 1]} : vector<4x128xf32> to vector<4x32xf32>
    %163 = arith.negf %162 : vector<4x32xf32>
    %164 = math.exp %163 : vector<4x32xf32>
    %cst_40 = arith.constant 1.000000e+00 : f32
    %165 = vector.broadcast %cst_40 : f32 to vector<4x32xf32>
    %166 = arith.addf %165, %164 : vector<4x32xf32>
    %167 = arith.divf %165, %166 : vector<4x32xf32>
    %168 = arith.mulf %159, %137 : vector<4x32xf32>
    %169 = arith.mulf %153, %161 : vector<4x32xf32>
    %170 = arith.addf %168, %169 : vector<4x32xf32>
    %171 = math.tanh %170 : vector<4x32xf32>
    %172 = arith.mulf %167, %171 : vector<4x32xf32>
    %173 = arith.truncf %172 : vector<4x32xf32> to vector<4x32xbf16>
    %c4 = arith.constant 4 : index
    %c0_41 = arith.constant 0 : index
    %c0_42 = arith.constant 0 : index
    %174 = vector.load %arg5[%c4, %c0_41, %c0_42] : memref<8x4x32xbf16, #tpu.memory_space<vmem>>, vector<1x4x32xbf16>
    %175 = vector.shape_cast %174 : vector<1x4x32xbf16> to vector<4x32xbf16>
    %176 = vector.shape_cast %173 : vector<4x32xbf16> to vector<1x4x32xbf16>
    tpu.vector_store %arg5[%c4, %c0_41, %c0_42], %176 {strides = array<i32>} : memref<8x4x32xbf16, #tpu.memory_space<vmem>>, vector<1x4x32xbf16>,
    %177 = vector.extract_strided_slice %9 {offsets = [20, 0], sizes = [4, 128], strides = [1, 1]} : vector<32x128xf32> to vector<4x128xf32>
    %178 = arith.truncf %172 : vector<4x32xf32> to vector<4x32xbf16>
    %cst_43 = arith.constant dense<0.000000e+00> : vector<4x128xf32>
    %179 = tpu.matmul %178, %4, %cst_43 {dimension_numbers = #tpu.dot_dimension_numbers<[1], [0], [0], [1], [0, 0, 1, 1], [], []>} : vector<4x32xbf16>, vector<32x128xbf16>, vector<4x128xf32> -> vector<4x128xf32>
    %180 = arith.addf %177, %179 : vector<4x128xf32>
    %181 = vector.extract_strided_slice %180 {offsets = [0, 0], sizes = [4, 32], strides = [1, 1]} : vector<4x128xf32> to vector<4x32xf32>
    %182 = arith.negf %181 : vector<4x32xf32>
    %183 = math.exp %182 : vector<4x32xf32>
    %cst_44 = arith.constant 1.000000e+00 : f32
    %184 = vector.broadcast %cst_44 : f32 to vector<4x32xf32>
    %185 = arith.addf %184, %183 : vector<4x32xf32>
    %186 = arith.divf %184, %185 : vector<4x32xf32>
    %187 = vector.extract_strided_slice %180 {offsets = [0, 32], sizes = [4, 32], strides = [1, 1]} : vector<4x128xf32> to vector<4x32xf32>
    %188 = arith.negf %187 : vector<4x32xf32>
    %189 = math.exp %188 : vector<4x32xf32>
    %cst_45 = arith.constant 1.000000e+00 : f32
    %190 = vector.broadcast %cst_45 : f32 to vector<4x32xf32>
    %191 = arith.addf %190, %189 : vector<4x32xf32>
    %192 = arith.divf %190, %191 : vector<4x32xf32>
    %193 = vector.extract_strided_slice %180 {offsets = [0, 64], sizes = [4, 32], strides = [1, 1]} : vector<4x128xf32> to vector<4x32xf32>
    %194 = math.tanh %193 : vector<4x32xf32>
    %195 = vector.extract_strided_slice %180 {offsets = [0, 96], sizes = [4, 32], strides = [1, 1]} : vector<4x128xf32> to vector<4x32xf32>
    %196 = arith.negf %195 : vector<4x32xf32>
    %197 = math.exp %196 : vector<4x32xf32>
    %cst_46 = arith.constant 1.000000e+00 : f32
    %198 = vector.broadcast %cst_46 : f32 to vector<4x32xf32>
    %199 = arith.addf %198, %197 : vector<4x32xf32>
    %200 = arith.divf %198, %199 : vector<4x32xf32>
    %201 = arith.mulf %192, %170 : vector<4x32xf32>
    %202 = arith.mulf %186, %194 : vector<4x32xf32>
    %203 = arith.addf %201, %202 : vector<4x32xf32>
    %204 = math.tanh %203 : vector<4x32xf32>
    %205 = arith.mulf %200, %204 : vector<4x32xf32>
    %206 = arith.truncf %205 : vector<4x32xf32> to vector<4x32xbf16>
    %c5 = arith.constant 5 : index
    %c0_47 = arith.constant 0 : index
    %c0_48 = arith.constant 0 : index
    %207 = vector.load %arg5[%c5, %c0_47, %c0_48] : memref<8x4x32xbf16, #tpu.memory_space<vmem>>, vector<1x4x32xbf16>
    %208 = vector.shape_cast %207 : vector<1x4x32xbf16> to vector<4x32xbf16>
    %209 = vector.shape_cast %206 : vector<4x32xbf16> to vector<1x4x32xbf16>
    tpu.vector_store %arg5[%c5, %c0_47, %c0_48], %209 {strides = array<i32>} : memref<8x4x32xbf16, #tpu.memory_space<vmem>>, vector<1x4x32xbf16>,
    %210 = vector.extract_strided_slice %9 {offsets = [24, 0], sizes = [4, 128], strides = [1, 1]} : vector<32x128xf32> to vector<4x128xf32>
    %211 = arith.truncf %205 : vector<4x32xf32> to vector<4x32xbf16>
    %cst_49 = arith.constant dense<0.000000e+00> : vector<4x128xf32>
    %212 = tpu.matmul %211, %4, %cst_49 {dimension_numbers = #tpu.dot_dimension_numbers<[1], [0], [0], [1], [0, 0, 1, 1], [], []>} : vector<4x32xbf16>, vector<32x128xbf16>, vector<4x128xf32> -> vector<4x128xf32>
    %213 = arith.addf %210, %212 : vector<4x128xf32>
    %214 = vector.extract_strided_slice %213 {offsets = [0, 0], sizes = [4, 32], strides = [1, 1]} : vector<4x128xf32> to vector<4x32xf32>
    %215 = arith.negf %214 : vector<4x32xf32>
    %216 = math.exp %215 : vector<4x32xf32>
    %cst_50 = arith.constant 1.000000e+00 : f32
    %217 = vector.broadcast %cst_50 : f32 to vector<4x32xf32>
    %218 = arith.addf %217, %216 : vector<4x32xf32>
    %219 = arith.divf %217, %218 : vector<4x32xf32>
    %220 = vector.extract_strided_slice %213 {offsets = [0, 32], sizes = [4, 32], strides = [1, 1]} : vector<4x128xf32> to vector<4x32xf32>
    %221 = arith.negf %220 : vector<4x32xf32>
    %222 = math.exp %221 : vector<4x32xf32>
    %cst_51 = arith.constant 1.000000e+00 : f32
    %223 = vector.broadcast %cst_51 : f32 to vector<4x32xf32>
    %224 = arith.addf %223, %222 : vector<4x32xf32>
    %225 = arith.divf %223, %224 : vector<4x32xf32>
    %226 = vector.extract_strided_slice %213 {offsets = [0, 64], sizes = [4, 32], strides = [1, 1]} : vector<4x128xf32> to vector<4x32xf32>
    %227 = math.tanh %226 : vector<4x32xf32>
    %228 = vector.extract_strided_slice %213 {offsets = [0, 96], sizes = [4, 32], strides = [1, 1]} : vector<4x128xf32> to vector<4x32xf32>
    %229 = arith.negf %228 : vector<4x32xf32>
    %230 = math.exp %229 : vector<4x32xf32>
    %cst_52 = arith.constant 1.000000e+00 : f32
    %231 = vector.broadcast %cst_52 : f32 to vector<4x32xf32>
    %232 = arith.addf %231, %230 : vector<4x32xf32>
    %233 = arith.divf %231, %232 : vector<4x32xf32>
    %234 = arith.mulf %225, %203 : vector<4x32xf32>
    %235 = arith.mulf %219, %227 : vector<4x32xf32>
    %236 = arith.addf %234, %235 : vector<4x32xf32>
    %237 = math.tanh %236 : vector<4x32xf32>
    %238 = arith.mulf %233, %237 : vector<4x32xf32>
    %239 = arith.truncf %238 : vector<4x32xf32> to vector<4x32xbf16>
    %c6 = arith.constant 6 : index
    %c0_53 = arith.constant 0 : index
    %c0_54 = arith.constant 0 : index
    %240 = vector.load %arg5[%c6, %c0_53, %c0_54] : memref<8x4x32xbf16, #tpu.memory_space<vmem>>, vector<1x4x32xbf16>
    %241 = vector.shape_cast %240 : vector<1x4x32xbf16> to vector<4x32xbf16>
    %242 = vector.shape_cast %239 : vector<4x32xbf16> to vector<1x4x32xbf16>
    tpu.vector_store %arg5[%c6, %c0_53, %c0_54], %242 {strides = array<i32>} : memref<8x4x32xbf16, #tpu.memory_space<vmem>>, vector<1x4x32xbf16>,
    %243 = vector.extract_strided_slice %9 {offsets = [28, 0], sizes = [4, 128], strides = [1, 1]} : vector<32x128xf32> to vector<4x128xf32>
    %244 = arith.truncf %238 : vector<4x32xf32> to vector<4x32xbf16>
    %cst_55 = arith.constant dense<0.000000e+00> : vector<4x128xf32>
    %245 = tpu.matmul %244, %4, %cst_55 {dimension_numbers = #tpu.dot_dimension_numbers<[1], [0], [0], [1], [0, 0, 1, 1], [], []>} : vector<4x32xbf16>, vector<32x128xbf16>, vector<4x128xf32> -> vector<4x128xf32>
    %246 = arith.addf %243, %245 : vector<4x128xf32>
    %247 = vector.extract_strided_slice %246 {offsets = [0, 0], sizes = [4, 32], strides = [1, 1]} : vector<4x128xf32> to vector<4x32xf32>
    %248 = arith.negf %247 : vector<4x32xf32>
    %249 = math.exp %248 : vector<4x32xf32>
    %cst_56 = arith.constant 1.000000e+00 : f32
    %250 = vector.broadcast %cst_56 : f32 to vector<4x32xf32>
    %251 = arith.addf %250, %249 : vector<4x32xf32>
    %252 = arith.divf %250, %251 : vector<4x32xf32>
    %253 = vector.extract_strided_slice %246 {offsets = [0, 32], sizes = [4, 32], strides = [1, 1]} : vector<4x128xf32> to vector<4x32xf32>
    %254 = arith.negf %253 : vector<4x32xf32>
    %255 = math.exp %254 : vector<4x32xf32>
    %cst_57 = arith.constant 1.000000e+00 : f32
    %256 = vector.broadcast %cst_57 : f32 to vector<4x32xf32>
    %257 = arith.addf %256, %255 : vector<4x32xf32>
    %258 = arith.divf %256, %257 : vector<4x32xf32>
    %259 = vector.extract_strided_slice %246 {offsets = [0, 64], sizes = [4, 32], strides = [1, 1]} : vector<4x128xf32> to vector<4x32xf32>
    %260 = math.tanh %259 : vector<4x32xf32>
    %261 = vector.extract_strided_slice %246 {offsets = [0, 96], sizes = [4, 32], strides = [1, 1]} : vector<4x128xf32> to vector<4x32xf32>
    %262 = arith.negf %261 : vector<4x32xf32>
    %263 = math.exp %262 : vector<4x32xf32>
    %cst_58 = arith.constant 1.000000e+00 : f32
    %264 = vector.broadcast %cst_58 : f32 to vector<4x32xf32>
    %265 = arith.addf %264, %263 : vector<4x32xf32>
    %266 = arith.divf %264, %265 : vector<4x32xf32>
    %267 = arith.mulf %258, %236 : vector<4x32xf32>
    %268 = arith.mulf %252, %260 : vector<4x32xf32>
    %269 = arith.addf %267, %268 : vector<4x32xf32>
    %270 = math.tanh %269 : vector<4x32xf32>
    %271 = arith.mulf %266, %270 : vector<4x32xf32>
    %272 = arith.truncf %271 : vector<4x32xf32> to vector<4x32xbf16>
    %c7 = arith.constant 7 : index
    %c0_59 = arith.constant 0 : index
    %c0_60 = arith.constant 0 : index
    %273 = vector.load %arg5[%c7, %c0_59, %c0_60] : memref<8x4x32xbf16, #tpu.memory_space<vmem>>, vector<1x4x32xbf16>
    %274 = vector.shape_cast %273 : vector<1x4x32xbf16> to vector<4x32xbf16>
    %275 = vector.shape_cast %272 : vector<4x32xbf16> to vector<1x4x32xbf16>
    tpu.vector_store %arg5[%c7, %c0_59, %c0_60], %275 {strides = array<i32>} : memref<8x4x32xbf16, #tpu.memory_space<vmem>>, vector<1x4x32xbf16>,
    %c0_61 = arith.constant 0 : index
    %c0_62 = arith.constant 0 : index
    %276 = vector.load %arg6[%c0_61, %c0_62] : memref<4x32xf32, #tpu.memory_space<vmem>>, vector<4x32xf32>
    tpu.vector_store %arg6[%c0_61, %c0_62], %271 {strides = array<i32>} : memref<4x32xf32, #tpu.memory_space<vmem>>, vector<4x32xf32>,
    %c0_63 = arith.constant 0 : index
    %c0_64 = arith.constant 0 : index
    %277 = vector.load %arg7[%c0_63, %c0_64] : memref<4x32xf32, #tpu.memory_space<vmem>>, vector<4x32xf32>
    tpu.vector_store %arg7[%c0_63, %c0_64], %269 {strides = array<i32>} : memref<4x32xf32, #tpu.memory_space<vmem>>, vector<4x32xf32>,
    return
  }
  func.func @transform_0(%arg0: i32) -> (i32, i32) {
    %c0_i32 = arith.constant 0 : i32
    %c0_i32_0 = arith.constant 0 : i32
    return %arg0, %c0_i32 : i32, i32
  }
  func.func @transform_1(%arg0: i32) -> (i32, i32) {
    %c0_i32 = arith.constant 0 : i32
    %c0_i32_0 = arith.constant 0 : i32
    %c0_i32_1 = arith.constant 0 : i32
    return %c0_i32, %c0_i32_0 : i32, i32
  }
  func.func @transform_2(%arg0: i32) -> (i32, i32) {
    %c0_i32 = arith.constant 0 : i32
    %c0_i32_0 = arith.constant 0 : i32
    %c0_i32_1 = arith.constant 0 : i32
    return %c0_i32, %c0_i32_0 : i32, i32
  }
  func.func @transform_3(%arg0: i32) -> (i32, i32) {
    %c0_i32 = arith.constant 0 : i32
    %c0_i32_0 = arith.constant 0 : i32
    %c0_i32_1 = arith.constant 0 : i32
    return %c0_i32, %c0_i32_0 : i32, i32
  }
  func.func @transform_4(%arg0: i32) -> (i32, i32, i32) {
    %c0_i32 = arith.constant 0 : i32
    %c0_i32_0 = arith.constant 0 : i32
    %c0_i32_1 = arith.constant 0 : i32
    return %arg0, %c0_i32, %c0_i32_0 : i32, i32, i32
  }
}

</mosaic_0001>

<bundles_post_ra>
// kernel: tpu_custom_call.1
= control target key start
LH: loop header
LB: loop body
LE: loop exit
PB: predicated region body
PF: predicated region fallthrough
CT: control target
= control target key end

     0   :  { %v1094_v1 = vmov 0.0   ;;  %vm59_vm0 = vcmask 130048   ;;  %vm23_vm1 = vcmask 257024   ;;  %vm1095_vm2 = vmmov 0   ;;  %s1310_s0 = inlined_call_operand.vmem [shape: bf16[32,16], index: 0, kind: input, shape index: {}]   ;;  %s1311_s1 = inlined_call_operand.vmem [shape: bf16[16,128], index: 1, kind: input, shape index: {}]   ;;  %s1312_s2 = inlined_call_operand.vmem [shape: f32[1,128], index: 2, kind: input, shape index: {}]   ;;  %s1313_s3 = inlined_call_operand.vmem [shape: bf16[32,128], index: 3, kind: input, shape index: {}]   ;;  %s1314_s4 = inlined_call_operand.hbm [shape: bf16[8,4,32], index: 4, kind: output, shape index: {}]  }
   0x1   :  { %v1001_v0 = vld [vmem:[%s1311_s1] sm:$0xff]   ;;  %929 = vmatprep.subr.bf16.mxu1 %v1094_v1  ;;  %v1004_v4 = vld [vmem:[%s1310_s0 + $0x8] sm:$0xff]   ;;  %24 = vst.msk [vmem:[#allocation2] sm:$0xf] %vm23_vm1, %v1094_v1  ;;  %25 = vst.msk [vmem:[#allocation3] sm:$0xf] %vm23_vm1, %v1094_v1  ;;  %933 = vmatprep.mubr.msk.bf16.mxu1 %vm1095_vm2, %v1094_v1 }
   0x2   :  { %v1134_v2 = vld [vmem:[%s1313_s3] sm:$0xff]   ;;  %923 = vmatprep.subr.bf16.mxu0 %v1001_v0  ;;  %v1148_v5 = vld [vmem:[%s1313_s3 + $0x8] sm:$0xff]  }
   0x3   :  { %v1003_v3 = vld [vmem:[%s1310_s0] sm:$0xff]   ;;  %924 = vmatpush3.bf16.msra.mxu0 %v1001_v0  ;;  %930 = vmatpush3.bf16.msra.mxu1 %v1134_v2 }
   0x4   :  { %925 = vmatprep.mubr.msk.bf16.mxu0 %vm59_vm0, %v1003_v3  ;;  %931 = vmatprep.subr.bf16.mxu1 %v1094_v1 }
   0x5   :  { %937 = vmatprep.subr.bf16.mxu0 %v1094_v1 }
   0x6   :  { %9 = vsyncpa [#allocation5], 0  ;;  %926 = vmatmul.mubr.msk.bf16.vlgmr.msra.gmra.mrb[0].mxu0 %vm59_vm0, %v1004_v4  ;;  %vm130_vm3 = vcmask 261120   ;;  %v872_v8 = vld [vmem:[%s1312_s2] ss:$0 sm:$0xff]  ;;  %s1096_s24 = smov 64  }
   0x7   :  { %932 = vmatpush3.bf16.msra.mxu1 %v1148_v5  ;;  %938 = vmatpush3.bf16.msra.mxu0 %v1134_v2  ;;  %s1097_s2 = smov 32   ;;  %vm215_vm4 = vcmask 254976   ;;  %s1099_s25 = smov 96   ;;  %vm849_vm5 = vcmask 261124  }
   0x8   :  { %939 = vmatprep.subr.bf16.mxu0 %v1094_v1  ;;  %941 = vmatprep.mubr.msk.bf16.mxu0 %vm1095_vm2, %v1094_v1  ;;  %v115_v6 = vld [vmem:[#allocation2] sm:$0xf]  ;;  %v116_v23 = vld [vmem:[#allocation3] sm:$0xf]  ;;  %s1100_s26 = smov [#allocation4]  }
   0x9   :  { %945 = vmatprep.subr.bf16.mxu1 %v1094_v1  ;;  %v117_v7 = vpack.c.bf16 %v115_v6, %v115_v6  ;;  %s861_s27 = sshll.u32 %s1100_s26, 4  ;;  %s862_s27 = int_to_ptr.vmem [resolvable:$true] %s861_s27 }
   0xa   :  { %s1070_s28 = scalar_lea.vmem %s862_s27, 256  ;;  %p1075_p1 = scmp.lt.s32.totalorder %s862_s27, %s862_s27 }
   0xb   :  { %940 = vmatpush3.bf16.msra.mxu0 %v1148_v5  ;;  %934 = vmatmul.mubr.msk.bf16.vlgmr.msra.gmra.mrb[0].mxu1 %vm130_vm3, %v117_v7  ;;  %p1071_p0 = scmp.ne.s32.totalorder %s862_s27, %s1070_s28  ;;  %p1076_p2 = scmp.lt.s32.totalorder %s1070_s28, %s1070_s28 }
   0xc   :  { %953 = vmatprep.subr.bf16.mxu0 %v1094_v1  ;;  %946 = vmatpush3.bf16.msra.mxu1 %v1134_v2 }
   0xd   :  { %949 = vmatprep.mubr.msk.bf16.mxu1 %vm1095_vm2, %v1094_v1  ;;  %947 = vmatprep.subr.bf16.mxu1 %v1094_v1  ;;  %p1077_p3 = por %p1076_p2, %p1075_p1 }
   0xf   :  { %p1078_p4 = pnand %p1077_p3, %p1071_p0 }
  0x10   :  { %948 = vmatpush3.bf16.msra.mxu1 %v1148_v5 }
  0x11   :  { %961 = vmatprep.subr.bf16.mxu1 %v1094_v1 }
  0xd9   :  { %v927_v9 = vpop.f32.mrb[0].mxu0 }
  0xda   :  { %v1174_v10 = vadd.f32 %v927_v9, %v872_v8  ;;  %v100_v11 = vpop.f32.mrb[1].mxu0 }
  0xdb   :  { %v928_v12 = vpop.f32.mrb[2].mxu0  ;;  %v101_v16 = vadd.f32 %v872_v8, %v100_v11 }
  0xdc   :  { %v1176_v13 = vadd.f32 %v928_v12, %v872_v8  ;;  %v103_v14 = vpop.f32.mrb[3].mxu0 }
  0xdd   :  { %v1178_v15 = vadd.f32 %v872_v8, %v103_v14 }
  0xde   :  { %v168_v17 = vpop.f32.mrb[0].mxu1 }
  0xdf   :  { %v174_v18 = vadd.f32 %v168_v17, %v101_v16  ;;  %v935_v19 = vpop.f32.mrb[1].mxu1 }
  0xe0   :  { %v171_v20 = vpop.f32.mrb[2].mxu1 }
  0xe1   :  { %1006 = vtanh.f32 %v174_v18  ;;  %v936_v21 = vpop.f32.mrb[3].mxu1  ;;  %v881_v24 = vmul.f32 -1.442695, %v174_v18 }
  0xe3   :  { %1008 = vpow2.f32 %v881_v24 }
  0xeb   :  { %v1007_v22 = vpop.eup %1006 }
  0xec   :  { %188 = vrot.lane.b32.xlu0 %v1007_v22, %s1096_s24 }
  0xed   :  { %v1009_v25 = vpop.eup %1008 }
  0xee   :  { %v178_v26 = vadd.f32 1.0, %v1009_v25 }
  0xf0   :  { %183 = vrot.lane.b32.xlu0 %v116_v23, %s1097_s2  ;;  %1010 = vrcp.f32 %v178_v26 }
  0xfa   :  { %v1011_v27 = vpop.eup %1010 }
 0x15e   :  { %v189_v28 = vpop.permute.xlu0 %188 }
 0x15f   :  { %v191_v29 = vmul.f32 %v1011_v27, %v189_v28 }
 0x161   :  { %193 = vrot.lane.b32.xlu1 %v191_v29, %s1097_s2 }
 0x162   :  { %v184_v30 = vpop.permute.xlu0 %183 }
 0x163   :  { %v186_v31 = vmul.f32 %v1011_v27, %v184_v30 }
 0x1d3   :  { %v194_v32 = vpop.permute.xlu1 %193 }
 0x1d4   :  { %v196_v33 = vadd.f32 %v194_v32, %v186_v31 }
 0x1d6   :  { %1012 = vtanh.f32 %v196_v33  ;;  %v274_v52 = vrot.slane %v196_v33, 4 }
 0x1e0   :  { %v1013_v34 = vpop.eup %1012 }
 0x1e1   :  { %199 = vrot.lane.b32.xlu1 %v1013_v34, %s1096_s24 }
 0x253   :  { %v200_v35 = vpop.permute.xlu1 %199 }
 0x254   :  { %v202_v36 = vmul.f32 %v1011_v27, %v200_v35 }
 0x256   :  { %v1184_v37 = vpack.c.bf16 %v202_v36, %v202_v36 }
 0x258   :  { %217 = vrot.lane.b32.xlu0 %v1184_v37, %s1097_s2 }
 0x2ca   :  { %v218_v38 = vpop.permute.xlu0 %217 }
 0x2cb   :  { %942 = vmatmul.mubr.msk.bf16.vlgmr.msra.gmra.mrb[4].mxu0 %vm130_vm3, %v218_v38 }
 0x2cc   :  { %954 = vmatpush3.bf16.msra.mxu0 %v1134_v2  ;;  %957 = vmatprep.mubr.msk.bf16.mxu0 %vm1095_vm2, %v1094_v1 }
 0x2cd   :  { %955 = vmatprep.subr.bf16.mxu0 %v1094_v1 }
 0x2d0   :  { %956 = vmatpush3.bf16.msra.mxu0 %v1148_v5 }
 0x2d1   :  { %969 = vmatprep.subr.bf16.mxu0 %v1094_v1 }
 0x39e   :  { %v256_v39 = vpop.f32.mrb[4].mxu0 }
 0x39f   :  { %v263_v40 = vrot.slane %v256_v39, 4  ;;  %v943_v41 = vpop.f32.mrb[5].mxu0 }
 0x3a0   :  { %v259_v42 = vpop.f32.mrb[6].mxu0 }
 0x3a1   :  { %v265_v43 = vadd.f32 %v263_v40, %v101_v16  ;;  %v944_v44 = vpop.f32.mrb[7].mxu0 }
 0x3a3   :  { %1014 = vtanh.f32 %v265_v43  ;;  %v883_v46 = vmul.f32 -1.442695, %v265_v43 }
 0x3a5   :  { %1016 = vpow2.f32 %v883_v46 }
 0x3ad   :  { %v1015_v45 = vpop.eup %1014 }
 0x3ae   :  { %278 = vrot.lane.b32.xlu1 %v1015_v45, %s1096_s24 }
 0x3af   :  { %v1017_v47 = vpop.eup %1016 }
 0x3b0   :  { %v269_v48 = vadd.f32 1.0, %v1017_v47 }
 0x3b2   :  { %1018 = vrcp.f32 %v269_v48 }
 0x3bc   :  { %v1019_v49 = vpop.eup %1018 }
 0x3bd   :  { %v276_v53 = vmul.f32 %v1019_v49, %v274_v52 }
 0x420   :  { %v279_v50 = vpop.permute.xlu1 %278 }
 0x421   :  { %v281_v51 = vmul.f32 %v1019_v49, %v279_v50 }
 0x423   :  { %283 = vrot.lane.b32.xlu0 %v281_v51, %s1097_s2 }
 0x495   :  { %v284_v54 = vpop.permute.xlu0 %283 }
 0x496   :  { %v286_v55 = vadd.f32 %v284_v54, %v276_v53 }
 0x498   :  { %1020 = vtanh.f32 %v286_v55  ;;  %v363_v16 = vrot.slane %v286_v55, 4 }
 0x4a2   :  { %v1021_v56 = vpop.eup %1020 }
 0x4a3   :  { %289 = vrot.lane.b32.xlu1 %v1021_v56, %s1096_s24 }
 0x515   :  { %v290_v57 = vpop.permute.xlu1 %289 }
 0x516   :  { %v292_v58 = vmul.f32 %v1019_v49, %v290_v57 }
 0x518   :  { %v1198_v59 = vpack.c.bf16 %v292_v58, %v292_v58 }
 0x51a   :  { %v308_v60 = vrot.slane %v1198_v59, 2 }
 0x51c   :  { %309 = vrot.lane.b32.xlu0 %v308_v60, %s1097_s2 }
 0x58e   :  { %v310_v61 = vpop.permute.xlu0 %309 }
 0x58f   :  { %950 = vmatmul.mubr.msk.bf16.vlgmr.msra.gmra.mrb[4].mxu1 %vm130_vm3, %v310_v61 }
 0x590   :  { %962 = vmatpush3.bf16.msra.mxu1 %v1134_v2  ;;  %965 = vmatprep.mubr.msk.bf16.mxu1 %vm1095_vm2, %v1094_v1 }
 0x591   :  { %963 = vmatprep.subr.bf16.mxu1 %v1094_v1 }
 0x594   :  { %964 = vmatpush3.bf16.msra.mxu1 %v1148_v5 }
 0x595   :  { %977 = vmatprep.subr.bf16.mxu1 %v1094_v1 }
 0x662   :  { %v348_v62 = vpop.f32.mrb[4].mxu1 }
 0x663   :  { %v354_v63 = vadd.f32 %v348_v62, %v1178_v15  ;;  %v951_v0 = vpop.f32.mrb[5].mxu1 }
 0x664   :  { %v351_v3 = vpop.f32.mrb[6].mxu1 }
 0x665   :  { %1022 = vtanh.f32 %v354_v63  ;;  %v952_v4 = vpop.f32.mrb[7].mxu1  ;;  %v885_v7 = vmul.f32 -1.442695, %v354_v63 }
 0x667   :  { %1024 = vpow2.f32 %v885_v7 }
 0x66f   :  { %v1023_v6 = vpop.eup %1022 }
 0x670   :  { %367 = vrot.lane.b32.xlu1 %v1023_v6, %s1096_s24 }
 0x671   :  { %v1025_v8 = vpop.eup %1024 }
 0x672   :  { %v358_v9 = vadd.f32 1.0, %v1025_v8 }
 0x674   :  { %1026 = vrcp.f32 %v358_v9 }
 0x67e   :  { %v1027_v11 = vpop.eup %1026 }
 0x67f   :  { %v365_v17 = vmul.f32 %v1027_v11, %v363_v16 }
 0x6e2   :  { %v368_v12 = vpop.permute.xlu1 %367 }
 0x6e3   :  { %v370_v14 = vmul.f32 %v1027_v11, %v368_v12 }
 0x6e5   :  { %372 = vrot.lane.b32.xlu0 %v370_v14, %s1097_s2 }
 0x757   :  { %v373_v18 = vpop.permute.xlu0 %372 }
 0x758   :  { %v375_v19 = vadd.f32 %v373_v18, %v365_v17 }
 0x75a   :  { %1028 = vtanh.f32 %v375_v19  ;;  %v453_v39 = vrot.slane %v375_v19, 4 }
 0x764   :  { %v1029_v20 = vpop.eup %1028 }
 0x765   :  { %378 = vrot.lane.b32.xlu1 %v1029_v20, %s1096_s24 }
 0x7d7   :  { %v379_v21 = vpop.permute.xlu1 %378 }
 0x7d8   :  { %v381_v22 = vmul.f32 %v1027_v11, %v379_v21 }
 0x7da   :  { %v1213_v23 = vpack.c.bf16 %v381_v22, %v381_v22 }
 0x7dc   :  { %396 = vrot.lane.b32.xlu0 %v1213_v23, %s1097_s2 }
 0x84e   :  { %v397_v24 = vpop.permute.xlu0 %396 }
 0x84f   :  { %958 = vmatmul.mubr.msk.bf16.vlgmr.msra.gmra.mrb[8].mxu0 %vm130_vm3, %v397_v24 }
 0x850   :  { %970 = vmatpush3.bf16.msra.mxu0 %v1134_v2  ;;  %973 = vmatprep.mubr.msk.bf16.mxu0 %vm1095_vm2, %v1094_v1 }
 0x851   :  { %971 = vmatprep.subr.bf16.mxu0 %v1094_v1 }
 0x854   :  { %972 = vmatpush3.bf16.msra.mxu0 %v1148_v5 }
 0x855   :  { %985 = vmatprep.subr.bf16.mxu0 %v1094_v1 }
 0x922   :  { %v435_v25 = vpop.f32.mrb[8].mxu0 }
 0x923   :  { %v442_v26 = vrot.slane %v435_v25, 4  ;;  %v959_v27 = vpop.f32.mrb[9].mxu0 }
 0x924   :  { %v438_v28 = vpop.f32.mrb[10].mxu0 }
 0x925   :  { %v444_v29 = vadd.f32 %v442_v26, %v1178_v15  ;;  %v960_v30 = vpop.f32.mrb[11].mxu0 }
 0x927   :  { %1030 = vtanh.f32 %v444_v29  ;;  %v887_v32 = vmul.f32 -1.442695, %v444_v29 }
 0x929   :  { %1032 = vpow2.f32 %v887_v32 }
 0x931   :  { %v1031_v31 = vpop.eup %1030 }
 0x932   :  { %457 = vrot.lane.b32.xlu1 %v1031_v31, %s1096_s24 }
 0x933   :  { %v1033_v33 = vpop.eup %1032 }
 0x934   :  { %v448_v34 = vadd.f32 1.0, %v1033_v33 }
 0x936   :  { %1034 = vrcp.f32 %v448_v34 }
 0x940   :  { %v1035_v35 = vpop.eup %1034 }
 0x941   :  { %v455_v40 = vmul.f32 %v1035_v35, %v453_v39 }
 0x9a4   :  { %v458_v36 = vpop.permute.xlu1 %457 }
 0x9a5   :  { %v460_v38 = vmul.f32 %v1035_v35, %v458_v36 }
 0x9a7   :  { %462 = vrot.lane.b32.xlu0 %v460_v38, %s1097_s2 }
 0xa19   :  { %v463_v41 = vpop.permute.xlu0 %462 }
 0xa1a   :  { %v465_v42 = vadd.f32 %v463_v41, %v455_v40 }
 0xa1c   :  { %1036 = vtanh.f32 %v465_v42  ;;  %v542_v61 = vrot.slane %v465_v42, 4 }
 0xa26   :  { %v1037_v15 = vpop.eup %1036 }
 0xa27   :  { %468 = vrot.lane.b32.xlu1 %v1037_v15, %s1096_s24 }
 0xa99   :  { %v469_v43 = vpop.permute.xlu1 %468 }
 0xa9a   :  { %v471_v44 = vmul.f32 %v1035_v35, %v469_v43 }
 0xa9c   :  { %v1228_v45 = vpack.c.bf16 %v471_v44, %v471_v44 }
 0xa9e   :  { %v487_v46 = vrot.slane %v1228_v45, 2 }
 0xaa0   :  { %488 = vrot.lane.b32.xlu0 %v487_v46, %s1097_s2 }
 0xb12   :  { %v489_v47 = vpop.permute.xlu0 %488 }
 0xb13   :  { %966 = vmatmul.mubr.msk.bf16.vlgmr.msra.gmra.mrb[8].mxu1 %vm130_vm3, %v489_v47 }
 0xb14   :  { %978 = vmatpush3.bf16.msra.mxu1 %v1134_v2  ;;  %981 = vmatprep.mubr.msk.bf16.mxu1 %vm1095_vm2, %v1094_v1 }
 0xb15   :  { %979 = vmatprep.subr.bf16.mxu1 %v1094_v1 }
 0xb18   :  { %980 = vmatpush3.bf16.msra.mxu1 %v1148_v5 }
 0xbe6   :  { %v527_v48 = vpop.f32.mrb[8].mxu1 }
 0xbe7   :  { %v533_v49 = vadd.f32 %v527_v48, %v1174_v10  ;;  %v967_v50 = vpop.f32.mrb[9].mxu1 }
 0xbe8   :  { %v530_v51 = vpop.f32.mrb[10].mxu1 }
 0xbe9   :  { %1038 = vtanh.f32 %v533_v49  ;;  %v968_v52 = vpop.f32.mrb[11].mxu1  ;;  %v889_v54 = vmul.f32 -1.442695, %v533_v49 }
 0xbeb   :  { %1040 = vpow2.f32 %v889_v54 }
 0xbf3   :  { %v1039_v53 = vpop.eup %1038 }
 0xbf4   :  { %546 = vrot.lane.b32.xlu1 %v1039_v53, %s1096_s24 }
 0xbf5   :  { %v1041_v55 = vpop.eup %1040 }
 0xbf6   :  { %v537_v56 = vadd.f32 1.0, %v1041_v55 }
 0xbf8   :  { %1042 = vrcp.f32 %v537_v56 }
 0xc02   :  { %v1043_v57 = vpop.eup %1042 }
 0xc03   :  { %v544_v62 = vmul.f32 %v1043_v57, %v542_v61 }
 0xc66   :  { %v547_v58 = vpop.permute.xlu1 %546 }
 0xc67   :  { %v549_v60 = vmul.f32 %v1043_v57, %v547_v58 }
 0xc69   :  { %551 = vrot.lane.b32.xlu0 %v549_v60, %s1097_s2 }
 0xcdb   :  { %v552_v63 = vpop.permute.xlu0 %551 }
 0xcdc   :  { %v554_v0 = vadd.f32 %v552_v63, %v544_v62 }
 0xcde   :  { %1044 = vtanh.f32 %v554_v0 }
 0xce8   :  { %v1045_v3 = vpop.eup %1044 }
 0xce9   :  { %557 = vrot.lane.b32.xlu1 %v1045_v3, %s1096_s24  ;;  %v1098_v3 = vmov 1983009808  }
 0xd5b   :  { %v558_v4 = vpop.permute.xlu1 %557 }
 0xd5c   :  { %v560_v6 = vmul.f32 %v1043_v57, %v558_v4  ;;  %v206_v4 = vunpack.c.l.s4 %v1098_v3 }
 0xd5e   :  { %v1242_v7 = vpack.c.bf16 %v560_v6, %v560_v6  ;;  %v208_v6 = vlaneseq }
 0xd60   :  { %575 = vrot.lane.b32.xlu0 %v1242_v7, %s1097_s2 }
 0xdd2   :  { %v576_v8 = vpop.permute.xlu0 %575 }
 0xdd3   :  { %974 = vmatmul.mubr.msk.bf16.vlgmr.msra.gmra.mrb[12].mxu0 %vm130_vm3, %v576_v8  ;;  %v207_v8 = vunpack.c.0.s8 %v206_v4 }
 0xdd4   :  { %986 = vmatpush3.bf16.msra.mxu0 %v1134_v2  ;;  %989 = vmatprep.mubr.msk.bf16.mxu0 %vm1095_vm2, %v1094_v1 }
 0xdd5   :  { %987 = vmatprep.subr.bf16.mxu0 %v1094_v1 }
 0xdd8   :  { %988 = vmatpush3.bf16.msra.mxu0 %v1148_v5  ;;  %v632_v5 = vrot.slane %v554_v0, 4 }
 0xea6   :  { %v614_v9 = vpop.f32.mrb[12].mxu0 }
 0xea7   :  { %v621_v11 = vrot.slane %v614_v9, 4  ;;  %v975_v12 = vpop.f32.mrb[13].mxu0  ;;  %v209_v9 = vshrl.u32 %v208_v6, 7 }
 0xea8   :  { %v617_v14 = vpop.f32.mrb[14].mxu0 }
 0xea9   :  { %v623_v16 = vadd.f32 %v621_v11, %v1174_v10  ;;  %v976_v17 = vpop.f32.mrb[15].mxu0  ;;  %v210_v14 = vsub.s32 %v207_v8, %v209_v9 }
 0xeab   :  { %1046 = vtanh.f32 %v623_v16  ;;  %v891_v19 = vmul.f32 -1.442695, %v623_v16  ;;  %v390_v17 = vrot.slane %v1213_v23, %v210_v14  ;;  %v301_v23 = vrot.slane %v1198_v59, %v210_v14 }
 0xead   :  { %1048 = vpow2.f32 %v891_v19 }
 0xeb5   :  { %v1047_v18 = vpop.eup %1046 }
 0xeb6   :  { %636 = vrot.lane.b32.xlu1 %v1047_v18, %s1096_s24  ;;  %v569_v18 = vrot.slane %v1242_v7, %v210_v14 }
 0xeb7   :  { %v1049_v2 = vpop.eup %1048 }
 0xeb8   :  { %v627_v20 = vadd.f32 1.0, %v1049_v2 }
 0xeba   :  { %1050 = vrcp.f32 %v627_v20 }
 0xec4   :  { %v1051_v21 = vpop.eup %1050 }
 0xec5   :  { %v634_v24 = vmul.f32 %v1051_v21, %v632_v5 }
 0xf28   :  { %v637_v1 = vpop.permute.xlu1 %636 }
 0xf29   :  { %v639_v22 = vmul.f32 %v1051_v21, %v637_v1 }
 0xf2b   :  { %641 = vrot.lane.b32.xlu0 %v639_v22, %s1097_s2 }
 0xf9d   :  { %v642_v25 = vpop.permute.xlu0 %641 }
 0xf9e   :  { %v644_v26 = vadd.f32 %v642_v25, %v634_v24  ;;  %v302_v24 = vcombine.high %v301_v23, %v301_v23  ;;  %v480_v25 = vrot.slane %v1228_v45, %v210_v14 }
 0xfa0   :  { %1052 = vtanh.f32 %v644_v26  ;;  %v721_v44 = vrot.slane %v644_v26, 4 }
 0xfaa   :  { %v1053_v10 = vpop.eup %1052 }
 0xfab   :  { %647 = vrot.lane.b32.xlu1 %v1053_v10, %s1096_s24  ;;  %v481_v10 = vcombine.high %v480_v25, %v480_v25 }
0x101d   :  { %v648_v27 = vpop.permute.xlu1 %647 }
0x101e   :  { %v650_v28 = vmul.f32 %v1051_v21, %v648_v27 }
0x1020   :  { %v1256_v29 = vpack.c.bf16 %v650_v28, %v650_v28 }
0x1022   :  { %v666_v30 = vrot.slane %v1256_v29, 2  ;;  %v659_v27 = vrot.slane %v1256_v29, %v210_v14 }
0x1024   :  { %667 = vrot.lane.b32.xlu0 %v666_v30, %s1097_s2  ;;  %v660_v59 = vcombine.high %v659_v27, %v659_v27 }
0x1096   :  { %v668_v31 = vpop.permute.xlu0 %667 }
0x1097   :  { %982 = vmatmul.mubr.msk.bf16.vlgmr.msra.gmra.mrb[12].mxu1 %vm130_vm3, %v668_v31 }
0x116a   :  { %v706_v32 = vpop.f32.mrb[12].mxu1 }
0x116b   :  { %v712_v33 = vadd.f32 %v706_v32, %v1176_v13  ;;  %v983_v34 = vpop.f32.mrb[13].mxu1 }
0x116c   :  { %v709_v35 = vpop.f32.mrb[14].mxu1 }
0x116d   :  { %1054 = vtanh.f32 %v712_v33  ;;  %v984_v36 = vpop.f32.mrb[15].mxu1  ;;  %v893_v39 = vmul.f32 -1.442695, %v712_v33 }
0x116f   :  { %1056 = vpow2.f32 %v893_v39 }
0x1177   :  { %v1055_v38 = vpop.eup %1054 }
0x1178   :  { %725 = vrot.lane.b32.xlu1 %v1055_v38, %s1096_s24 }
0x1179   :  { %v1057_v40 = vpop.eup %1056 }
0x117a   :  { %v716_v41 = vadd.f32 1.0, %v1057_v40 }
0x117c   :  { %1058 = vrcp.f32 %v716_v41 }
0x1186   :  { %v1059_v42 = vpop.eup %1058 }
0x1187   :  { %v723_v46 = vmul.f32 %v1059_v42, %v721_v44 }
0x11ea   :  { %v726_v15 = vpop.permute.xlu1 %725 }
0x11eb   :  { %v728_v43 = vmul.f32 %v1059_v42, %v726_v15 }
0x11ed   :  { %730 = vrot.lane.b32.xlu0 %v728_v43, %s1097_s2 }
0x125f   :  { %v731_v47 = vpop.permute.xlu0 %730 }
0x1260   :  { %v733_v48 = vadd.f32 %v731_v47, %v723_v46 }
0x1262   :  { %1060 = vtanh.f32 %v733_v48  ;;  %v811_v2 = vrot.slane %v733_v48, 4 }
0x126c   :  { %v1061_v49 = vpop.eup %1060 }
0x126d   :  { %736 = vrot.lane.b32.xlu1 %v1061_v49, %s1096_s24 }
0x12df   :  { %v737_v50 = vpop.permute.xlu1 %736 }
0x12e0   :  { %v739_v51 = vmul.f32 %v1059_v42, %v737_v50 }
0x12e2   :  { %v740_v52 = vpack.c.bf16 %v739_v51, %v739_v51 }
0x12e4   :  { %754 = vrot.lane.b32.xlu0 %v740_v52, %s1097_s2  ;;  %v748_v19 = vrot.slane %v740_v52, %v210_v14 }
0x1356   :  { %v755_v53 = vpop.permute.xlu0 %754 }
0x1357   :  { %990 = vmatmul.mubr.msk.bf16.vlgmr.msra.gmra.mrb[16].mxu0 %vm130_vm3, %v755_v53 }
0x142a   :  { %v793_v54 = vpop.f32.mrb[16].mxu0 }
0x142b   :  { %v800_v55 = vrot.slane %v793_v54, 4  ;;  %v991_v56 = vpop.f32.mrb[17].mxu0 }
0x142c   :  { %v796_v57 = vpop.f32.mrb[18].mxu0 }
0x142d   :  { %v802_v58 = vadd.f32 %v800_v55, %v1176_v13  ;;  %v992_v60 = vpop.f32.mrb[19].mxu0  ;;  %v211_v13 = vrot.slane %v1184_v37, %v210_v14 }
0x142f   :  { %1062 = vtanh.f32 %v802_v58  ;;  %v895_v62 = vmul.f32 -1.442695, %v802_v58 }
0x1431   :  { %1064 = vpow2.f32 %v895_v62 }
0x1439   :  { %v1063_v61 = vpop.eup %1062 }
0x143a   :  { %815 = vrot.lane.b32.xlu1 %v1063_v61, %s1096_s24 }
0x143b   :  { %v1065_v63 = vpop.eup %1064 }
0x143c   :  { %v806_v0 = vadd.f32 1.0, %v1065_v63 }
0x143e   :  { %1066 = vrcp.f32 %v806_v0 }
0x1448   :  { %v1067_v11 = vpop.eup %1066 }
0x1449   :  { %v813_v20 = vmul.f32 %v1067_v11, %v811_v2 }
0x14ac   :  { %v816_v12 = vpop.permute.xlu1 %815 }
0x14ad   :  { %v818_v16 = vmul.f32 %v1067_v11, %v816_v12 }
0x14af   :  { %820 = vrot.lane.b32.xlu0 %v818_v16, %s1097_s2 }
0x14b3   :  { %212 = vrot.lane.b32.xlu0 %v211_v13, %s1097_s2 }
0x14b7   :  { %391 = vrot.lane.b32.xlu0 %v390_v17, %s1097_s2 }
0x14bb   :  { %570 = vrot.lane.b32.xlu0 %v569_v18, %s1097_s2 }
0x14bf   :  { %749 = vrot.lane.b32.xlu0 %v748_v19, %s1097_s2 }
0x1521   :  { %v821_v21 = vpop.permute.xlu0 %820 }
0x1522   :  { %v823_v1 = vadd.f32 %v821_v21, %v813_v20 }
0x1524   :  { %1068 = vtanh.f32 %v823_v1 }
0x1525   :  { %v213_v37 = vpop.permute.xlu0 %212 }
0x1526   :  { %216 = vst.msk [vmem:[#allocation4] sm:$0x3] %vm215_vm4, %v213_v37 }
0x1529   :  { %v392_v22 = vpop.permute.xlu0 %391 }
0x152a   :  { %395 = vst.msk [vmem:[#allocation4 + $0x4] sm:$0x3] %vm215_vm4, %v392_v22 }
0x152d   :  { %v571_v7 = vpop.permute.xlu0 %570 }
0x152e   :  { %v1069_v5 = vpop.eup %1068  ;;  %574 = vst.msk [vmem:[#allocation4 + $0x8] sm:$0x3] %vm215_vm4, %v571_v7 }
0x152f   :  { %826 = vrot.lane.b32.xlu1 %v1069_v5, %s1096_s24 }
0x1531   :  { %v750_v26 = vpop.permute.xlu0 %749 }
0x1532   :  { %753 = vst.msk [vmem:[#allocation4 + $0xc] sm:$0x3] %vm215_vm4, %v750_v26 }
0x1533   :  { %303 = vrot.lane.b32.xlu1 %v302_v24, %s1097_s2 }
0x1537   :  { %482 = vrot.lane.b32.xlu1 %v481_v10, %s1097_s2 }
0x153b   :  { %661 = vrot.lane.b32.xlu1 %v660_v59, %s1097_s2 }
0x15a1   :  { %v827_v28 = vpop.permute.xlu1 %826 }
0x15a2   :  { %v829_v30 = vmul.f32 %v1067_v11, %v827_v28 }
0x15a4   :  { %v830_v31 = vpack.c.bf16 %v829_v30, %v829_v30  ;;  %846 = vrot.lane.b32.xlu0 %v829_v30, %s1097_s2 }
0x15a5   :  { %v304_v32 = vpop.permute.xlu1 %303 }
0x15a6   :  { %307 = vst.msk [vmem:[#allocation4 + $0x2] sm:$0x3] %vm215_vm4, %v304_v32  ;;  %v838_v45 = vrot.slane %v830_v31, %v210_v14 }
0x15a8   :  { %v839_v33 = vcombine.high %v838_v45, %v838_v45 }
0x15a9   :  { %v483_v34 = vpop.permute.xlu1 %482 }
0x15aa   :  { %486 = vst.msk [vmem:[#allocation4 + $0x6] sm:$0x3] %vm215_vm4, %v483_v34  ;;  %840 = vrot.lane.b32.xlu1 %v839_v33, %s1097_s2 }
0x15ad   :  { %v662_v29 = vpop.permute.xlu1 %661 }
0x15ae   :  { %665 = vst.msk [vmem:[#allocation4 + $0xa] sm:$0x3] %vm215_vm4, %v662_v29  ;;  %852 = vrot.lane.b32.xlu1 %v823_v1, %s1099_s25 }
0x1616   :  { %v847_v35 = vpop.permute.xlu0 %846 }
0x1617   :  { %850 = vst.msk [vmem:[#allocation2 - $0x4] sm:$0xf0] %vm849_vm5, %v847_v35 }
0x161c   :  { %v841_v36 = vpop.permute.xlu1 %840 }
0x161d   :  { %844 = vst.msk [vmem:[#allocation4 + $0xe] sm:$0x3] %vm215_vm4, %v841_v36 }
0x161e   :  { %1081 = shalt.err (!%p1078_p4)
}
0x161f   :  { %s1082_s5 = scalar_lea.hbm %s1314_s4, 256 }
0x1620   :  { %p1083_p5 = scmp.ne.s32.totalorder %s1314_s4, %s1082_s5  ;;  %p1086_p6 = scmp.lt.u32.totalorder %s1082_s5, %s1314_s4 }
0x1622   :  { %p1088_p7 = pnand %p1086_p6, %p1083_p5 }
0x1624   :  { %1091 = shalt.err (!%p1088_p7)
}
0x1625   :  { %s1101_s10 = smov 2   ;;  %v853_v38 = vpop.permute.xlu1 %852 }
0x1626   :  { %867 = dma.vmem_to_hbm [thread:$0]  %s862_s27, 256, %s1314_s4, [#allocation5], %s1097_s2, %s1097_s2, %s1101_s10   ;;  %855 = vst.msk [vmem:[#allocation3 - $0x4] sm:$0xf0] %vm849_vm5, %v853_v38 }
0x1627   :  { %1092 = dma.done.wait [#allocation5], 256  }
0x1628   :  { %1093 = vsyncadd [#allocation5], 4294967040 }
0x1629   :  { %871 = vsyncpa [#allocation5], 1 }

</bundles_post_ra>
